<compile_context>
chip_gen: v7x
topology: tpu7x:2x2x1
jax: 0.10.0
libtpu: 0.0.40
codegen_flags: <defaults>
</compile_context>

<pallas_src>
import numpy as np
import jax
import jax.numpy as jnp
from jax import lax
from jax.experimental import pallas as pl
from jax.experimental.pallas import tpu as pltpu


# ---------------------------------------------------------------------------
# complex64 <-> interleaved float32 boundary helpers
# ---------------------------------------------------------------------------
def _probe_complex_bitcast() -> bool:
    """True iff lax.bitcast_convert_type supports complex64<->float32 here and
    uses the standard (re, im) pair order."""
    try:
        z = jnp.arange(4, dtype=jnp.float32).reshape(2, 2)
        c = lax.bitcast_convert_type(z, jnp.complex64)        # (2,)
        f = lax.bitcast_convert_type(c, jnp.float32)          # (2, 2)
        ok = np.allclose(np.asarray(f), np.asarray(z))
        ok = ok and np.allclose(np.asarray(jnp.real(c)), np.asarray(z)[:, 0])
        ok = ok and np.allclose(np.asarray(jnp.imag(c)), np.asarray(z)[:, 1])
        return bool(ok)
    except Exception:
        return False


_COMPLEX_BITCAST_OK = _probe_complex_bitcast()


def _complex_to_interleaved(x):
    """complex64 (..., R) -> float32 (..., 2R), (re, im) interleaved."""
    if _COMPLEX_BITCAST_OK:
        f = lax.bitcast_convert_type(x, jnp.float32)           # zero copy view
    else:
        # TODO(synk): keep pipelines in interleaved f32 form to avoid this pass.
        f = jnp.stack([jnp.real(x), jnp.imag(x)], axis=-1)
    return f.reshape(*x.shape[:-1], x.shape[-1] * 2)


def _interleaved_to_complex(f):
    """float32 (..., 2R) interleaved -> complex64 (..., R)."""
    g = f.reshape(*f.shape[:-1], f.shape[-1] // 2, 2)
    if _COMPLEX_BITCAST_OK:
        return lax.bitcast_convert_type(g, jnp.complex64)
    return lax.complex(g[..., 0], g[..., 1])


# ---------------------------------------------------------------------------
# Kernel
# ---------------------------------------------------------------------------
def _phase_comp_kernel(x_ref, p_ref, q_ref, o_ref):
    """x_ref/o_ref/p_ref/q_ref: (Rt, Lt) float32.
    x is interleaved (re, im) along lanes; P = [c, c, ...], Q = [-d, +d, ...].
    Complex multiply (a+ib)(c+id):
        even lane 2k  : a*c + b*(-d) = ac - bd
        odd  lane 2k+1: b*c + a*(+d) = bc + ad
    i.e. out = x * P + pair_swap(x) * Q.
    """
    x = x_ref[...]
    p = p_ref[...]
    q = q_ref[...]
    lt = x.shape[1]

    lane = lax.broadcasted_iota(jnp.int32, x.shape, dimension=1)
    is_even = (lane & 1) == 0
    # pair_swap: lane 2k <- x[2k+1], lane 2k+1 <- x[2k]   (XLU rolls + VPU select)
    left = pltpu.roll(x, shift=lt - 1, axis=1)   # left[i]  = x[(i+1) mod Lt]
    right = pltpu.roll(x, shift=1, axis=1)       # right[i] = x[(i-1) mod Lt]
    x_swap = jnp.where(is_even, left, right)

    # TODO(synk): on v7x (VPU-bound), optionally drop the iota/cmp/select by
    # splitting Q into lane-masked Q_even/Q_odd tables (x*P + left*Qe + right*Qo).
    o_ref[...] = x * p + x_swap * q


# ---------------------------------------------------------------------------
# Host-side helpers (tiling + phase tables)
# ---------------------------------------------------------------------------
def _pad(n, m):
    return ((n + m - 1) // m) * m


def _divisors(n):
    return [d for d in range(1, n + 1) if n % d == 0]


def _vmem_capacity_bytes(default=64 * 1024 * 1024):
    try:
        info = pltpu.get_tpu_info()
        for attr in ("vmem_capacity_bytes", "vmem_bytes", "vmem_size_bytes"):
            v = getattr(info, attr, None)
            if v:
                return int(v)
    except Exception:
        pass
    return default   # conservative (v7x-sized) fallback


def _choose_tiling(B, T, Rx, V, R, cap_bytes):
    """Pick the (Vl, Vr, L, M, Lt, Rt) layout / tiles.

    Rows = Rx*Vr, lanes = Vl*R*2 (multiple of 128 whenever possible).  Budget is
    the *padded* working set of 4 blocks (x, out, P, Q) x double buffering."""
    R2 = R * 2
    v_lane = V
    for d in _divisors(V):
        if (d * R2) % 128 == 0:
            v_lane = d
            break
    Vr = V // v_lane
    L = v_lane * R2
    M = Rx * Vr

    total_budget = min(int(cap_bytes * 0.55), 48 * 1024 * 1024)
    block_budget = max(total_budget // 8, 64 * 1024)   # 4 operands, double-buffered

    # Lane tile: prefer the full lane axis (contiguous row DMA); only tile lanes
    # when a single 8-row slab would blow the budget.
    if 8 * _pad(L, 128) * 4 <= block_budget:
        Lt = L
    else:
        Lt = L
        t = min((block_budget // (8 * 4)) // 128 * 128, (L // 128) * 128)
        while t >= 128:
            if L % t == 0:
                Lt = t
                break
            t -= 128
    n_l = max(L // Lt, 1)

    # Row tile candidates: multiples of 8 dividing Vr, or multiples of Vr
    # dividing Rx*Vr (the latter make the table block index grid-constant).
    cands = set()
    for dd in _divisors(Vr):
        if dd % 8 == 0:
            cands.add(dd)
    for m in _divisors(Rx):
        rt = m * Vr
        if rt % 8 == 0 or rt == M:
            cands.add(rt)
    if not cands:
        cands.add(M)
    cands = sorted(cands)

    lt_pad = _pad(Lt, 128)
    fitting = [c for c in cands if _pad(c, 8) * lt_pad * 4 <= block_budget]
    Rt = fitting[-1] if fitting else cands[0]

    # Keep >= 4 grid steps so both v7x TensorCores stay busy / pipeline overlaps.
    def steps(rt):
        return T * (M // rt) * n_l * B

    if steps(Rt) < 4:
        for c in reversed([c for c in cands if c < Rt]):
            Rt = c
            if steps(Rt) >= 4:
                break

    return v_lane, Vr, L, M, Lt, Rt


def _build_phase_tables(n_tx, dop_bin, fft_rang, v_lane, table_rows):
    """Full-sublane phase tables of shape (T, table_rows, Vl*R*2):
         P[t, row, lane] =  cos(theta[t, v]),
         Q[t, row, lane] = -sin(theta[t, v]) on even lanes, +sin on odd lanes,
       with v = (row % Vr) * Vl + lane // (R*2) and
       theta[t, v] = -2*pi*(v - dop_bin/2)/dop_bin/N_tx * t."""
    V, R = dop_bin, fft_rang
    Vr = V // v_lane
    L = v_lane * R * 2
    v = jnp.arange(V, dtype=jnp.float32)
    theta = (jnp.arange(n_tx, dtype=jnp.float32)[:, None]
             * (-2.0 * jnp.pi * (v - V / 2.0) / V / n_tx)[None, :])      # (T, V)
    c = jnp.cos(theta).reshape(n_tx, Vr, v_lane)
    d = jnp.sin(theta).reshape(n_tx, Vr, v_lane)
    sign = jnp.array([-1.0, 1.0], dtype=jnp.float32)                     # even -> -sin
    p = jnp.broadcast_to(c[:, :, :, None, None],
                         (n_tx, Vr, v_lane, R, 2)).reshape(n_tx, Vr, L)
    q = jnp.broadcast_to(d[:, :, :, None, None] * sign,
                         (n_tx, Vr, v_lane, R, 2)).reshape(n_tx, Vr, L)
    if table_rows > Vr:
        reps = table_rows // Vr
        p = jnp.tile(p, (1, reps, 1))
        q = jnp.tile(q, (1, reps, 1))
    return p.astype(jnp.float32), q.astype(jnp.float32)


# ---------------------------------------------------------------------------
# Forward wrapper
# ---------------------------------------------------------------------------
def phase_compensation(x):
    """x: complex64 [batch, Tx, Rx, fft_vel, fft_rang] or [Tx, Rx, fft_vel, fft_rang].
    Returns x * delta_phi (same shape)."""
    squeeze = x.ndim == 4
    if squeeze:
        x = x[None]
    assert x.ndim == 5, "expected [batch, Tx, Rx, fft_vel, fft_rang]"
    x = x.astype(jnp.complex64)
    B, T, Rx, V, R = x.shape

    cap = _vmem_capacity_bytes()
    v_lane, Vr, L, M, Lt, Rt = _choose_tiling(B, T, Rx, V, R, cap)
    # Correctness guards for the roll-based pair swap (even lane-tile offsets).
    assert Lt % 2 == 0 and L % Lt == 0 and M % Rt == 0
    n_l, n_r = L // Lt, M // Rt

    table_rows = Rt if Rt >= Vr else Vr
    nvb = table_rows // Rt
    p_tbl, q_tbl = _build_phase_tables(T, V, R, v_lane, table_rows)

    # Free reshape of the contiguous interleaved layout to (B, T, Rx*Vr, Vl*R*2).
    xf = _complex_to_interleaved(x).reshape(B, T, M, L)

    x_spec = pl.BlockSpec(
        (pl.Squeezed(), pl.Squeezed(), Rt, Lt),
        lambda t, rb, lb, b: (b, t, rb, lb),
    )
    if nvb == 1:
        tbl_map = lambda t, rb, lb, b: (t, 0, lb)          # constant over rb & b
    else:
        tbl_map = lambda t, rb, lb, b: (t, rb % nvb, lb)   # constant over b
    tbl_spec = pl.BlockSpec((pl.Squeezed(), Rt, Lt), tbl_map)

    block_bytes = _pad(Rt, 8) * _pad(Lt, 128) * 4
    working = 2 * 4 * block_bytes                          # x, out, P, Q double-buffered
    vmem_limit = min(int(cap * 0.85),
                     max(32 * 1024 * 1024, working + (8 << 20)))

    out_f = pl.pallas_call(
        _phase_comp_kernel,
        out_shape=jax.ShapeDtypeStruct((B, T, M, L), jnp.float32),
        grid_spec=pltpu.PrefetchScalarGridSpec(
            num_scalar_prefetch=0,
            grid=(T, n_r, n_l, B),        # batch innermost -> tables not re-DMA'd
            in_specs=[x_spec, tbl_spec, tbl_spec],
            out_specs=x_spec,
        ),
        input_output_aliases={0: 0},      # overwrite the interleaved input in place
        compiler_params=pltpu.CompilerParams(
            dimension_semantics=("parallel", "parallel", "parallel", "parallel"),
            vmem_limit_bytes=vmem_limit,
        ),
    )(xf, p_tbl, q_tbl)

    out = _interleaved_to_complex(out_f.reshape(B, T, Rx, V, R * 2))
    if squeeze:
        out = out[0]
    return out


class PhaseCompensation:
    """JAX/Pallas port of the PyTorch PhaseCompensation module (forward only)."""

    def __init__(self, dop_bin, N_tx):
        self.dop_bin = int(dop_bin)
        self.N_tx = int(N_tx)

    def __call__(self, X):
        tx_axis = 0 if X.ndim == 4 else 1
        assert X.shape[tx_axis] == self.N_tx and X.shape[-2] == self.dop_bin
        return phase_compensation(X)


# ---------------------------------------------------------------------------
# Demo / correctness check
# ---------------------------------------------------------------------------
if __name__ == "__main__":
    batch, N_tx, Rx, dop_bin, fft_rang = 2, 2, 4, 16, 64

    key = jax.random.PRNGKey(0)
    kr, ki, kr2, ki2 = jax.random.split(key, 4)
    shape = (batch, N_tx, Rx, dop_bin, fft_rang)
    x = (jax.random.normal(kr, shape, jnp.float32)
         + 1j * jax.random.normal(ki, shape, jnp.float32)).astype(jnp.complex64)

    # Pure-JAX reference (same math as the PyTorch module).
    v = jnp.arange(dop_bin, dtype=jnp.float32)
    theta = (jnp.arange(N_tx, dtype=jnp.float32)[:, None]
             * (-2.0 * jnp.pi * (v - dop_bin / 2.0) / dop_bin / N_tx)[None, :])
    delta_phi = (jnp.cos(theta) + 1j * jnp.sin(theta)).astype(jnp.complex64)   # (Tx, V)
    ref = jax.block_until_ready(x * delta_phi[None, :, None, :, None])

    mod = PhaseCompensation(dop_bin, N_tx)
    fwd = jax.jit(mod.__call__, donate_argnums=(0,))   # donate -> true in-place HBM
    y = jax.block_until_ready(fwd(x))
    np.testing.assert_allclose(np.asarray(y), np.asarray(ref), rtol=1e-5, atol=1e-5)

    # Second check: 4-D (no batch) input with a short range axis (exercises the
    # Vl > 1 lane split and the squeeze path).  Not donated.
    fft_rang2 = 8
    shape2 = (N_tx, Rx, dop_bin, fft_rang2)
    x2 = (jax.random.normal(kr2, shape2, jnp.float32)
          + 1j * jax.random.normal(ki2, shape2, jnp.float32)).astype(jnp.complex64)
    ref2 = jax.block_until_ready(x2 * delta_phi[:, None, :, None])
    y2 = jax.block_until_ready(phase_compensation(x2))
    np.testing.assert_allclose(np.asarray(y2), np.asarray(ref2), rtol=1e-5, atol=1e-5)

    print("KERNEL_OK")
</pallas_src>

<mosaic_0001>
module attributes {stable_mosaic.version = 11 : i64} {
  func.func @_phase_comp_kernel(%arg0: i32, %arg1: i32, %arg2: i32, %arg3: i32, %arg4: memref<1x1x64x128xf32, #tpu.memory_space<vmem>>, %arg5: memref<1x64x128xf32, #tpu.memory_space<vmem>>, %arg6: memref<1x64x128xf32, #tpu.memory_space<vmem>>, %arg7: memref<1x1x64x128xf32, #tpu.memory_space<vmem>>) attributes {dimension_semantics = [#tpu.dimension_semantics<parallel>, #tpu.dimension_semantics<parallel>, #tpu.dimension_semantics<parallel>, #tpu.dimension_semantics<parallel>], iteration_bounds = array<i64: 2, 1, 1, 2>, scalar_prefetch = 0 : i64, scratch_operands = 0 : i64, tpu.core_type = #tpu.core_type<tc>, window_params = [{transform_indices = @transform_0, window_bounds = array<i64: 1, 1, 64, 128>}, {transform_indices = @transform_1, window_bounds = array<i64: 1, 64, 128>}, {transform_indices = @transform_2, window_bounds = array<i64: 1, 64, 128>}, {transform_indices = @transform_3, window_bounds = array<i64: 1, 1, 64, 128>}]} {
    %c0 = arith.constant 0 : index
    %c0_0 = arith.constant 0 : index
    %c0_1 = arith.constant 0 : index
    %c0_2 = arith.constant 0 : index
    %0 = vector.load %arg4[%c0, %c0_0, %c0_1, %c0_2] : memref<1x1x64x128xf32, #tpu.memory_space<vmem>>, vector<1x1x64x128xf32>
    %1 = vector.shape_cast %0 : vector<1x1x64x128xf32> to vector<64x128xf32>
    %c0_3 = arith.constant 0 : index
    %c0_4 = arith.constant 0 : index
    %c0_5 = arith.constant 0 : index
    %2 = vector.load %arg5[%c0_3, %c0_4, %c0_5] : memref<1x64x128xf32, #tpu.memory_space<vmem>>, vector<1x64x128xf32>
    %3 = vector.shape_cast %2 : vector<1x64x128xf32> to vector<64x128xf32>
    %c0_6 = arith.constant 0 : index
    %c0_7 = arith.constant 0 : index
    %c0_8 = arith.constant 0 : index
    %4 = vector.load %arg6[%c0_6, %c0_7, %c0_8] : memref<1x64x128xf32, #tpu.memory_space<vmem>>, vector<1x64x128xf32>
    %5 = vector.shape_cast %4 : vector<1x64x128xf32> to vector<64x128xf32>
    %6 = tpu.iota {dimensions = array<i32: 1>} : vector<64x128xi32>
    %c1_i32 = arith.constant 1 : i32
    %7 = vector.broadcast %c1_i32 : i32 to vector<64x128xi32>
    %8 = arith.andi %6, %7 : vector<64x128xi32>
    %c0_i32 = arith.constant 0 : i32
    %9 = vector.broadcast %c0_i32 : i32 to vector<64x128xi32>
    %10 = arith.cmpi eq, %8, %9 : vector<64x128xi32>
    %c127_i32 = arith.constant 127 : i32
    %11 = tpu.dynamic_rotate %1 by %c127_i32 dim 1 : vector<64x128xf32>, i32 -> vector<64x128xf32>
    %c1_i32_9 = arith.constant 1 : i32
    %12 = tpu.dynamic_rotate %1 by %c1_i32_9 dim 1 : vector<64x128xf32>, i32 -> vector<64x128xf32>
    %13 = arith.select %10, %11, %12 : vector<64x128xi1>, vector<64x128xf32>
    %14 = arith.mulf %1, %3 : vector<64x128xf32>
    %15 = arith.mulf %13, %5 : vector<64x128xf32>
    %16 = arith.addf %14, %15 : vector<64x128xf32>
    %c0_10 = arith.constant 0 : index
    %c0_11 = arith.constant 0 : index
    %c0_12 = arith.constant 0 : index
    %c0_13 = arith.constant 0 : index
    %17 = vector.load %arg7[%c0_10, %c0_11, %c0_12, %c0_13] : memref<1x1x64x128xf32, #tpu.memory_space<vmem>>, vector<1x1x64x128xf32>
    %18 = vector.shape_cast %17 : vector<1x1x64x128xf32> to vector<64x128xf32>
    %19 = vector.shape_cast %16 : vector<64x128xf32> to vector<1x1x64x128xf32>
    tpu.vector_store %arg7[%c0_10, %c0_11, %c0_12, %c0_13], %19 {strides = array<i32>} : memref<1x1x64x128xf32, #tpu.memory_space<vmem>>, vector<1x1x64x128xf32>,
    return
  }
  func.func @transform_0(%arg0: i32, %arg1: i32, %arg2: i32, %arg3: i32) -> (i32, i32, i32, i32) {
    %c0_i32 = arith.constant 0 : i32
    return %arg3, %arg0, %arg1, %arg2 : i32, i32, i32, i32
  }
  func.func @transform_1(%arg0: i32, %arg1: i32, %arg2: i32, %arg3: i32) -> (i32, i32, i32) {
    %c0_i32 = arith.constant 0 : i32
    %c0_i32_0 = arith.constant 0 : i32
    return %arg0, %c0_i32, %arg2 : i32, i32, i32
  }
  func.func @transform_2(%arg0: i32, %arg1: i32, %arg2: i32, %arg3: i32) -> (i32, i32, i32) {
    %c0_i32 = arith.constant 0 : i32
    %c0_i32_0 = arith.constant 0 : i32
    return %arg0, %c0_i32, %arg2 : i32, i32, i32
  }
  func.func @transform_3(%arg0: i32, %arg1: i32, %arg2: i32, %arg3: i32) -> (i32, i32, i32, i32) {
    %c0_i32 = arith.constant 0 : i32
    return %arg3, %arg0, %arg1, %arg2 : i32, i32, i32, i32
  }
}

</mosaic_0001>

<bundles_post_ra>
// kernel: custom-call
= control target key start
LH: loop header
LB: loop body
LE: loop exit
PB: predicated region body
PF: predicated region fallthrough
CT: control target
= control target key end

     0   :  { %2 = vsyncpa [#allocation0], 0  ;;  %s61_s0 = inlined_call_operand.hbm [shape: c64[2,2,4,16,64], index: 0, kind: input, shape index: {}]   ;;  %s62_s1 = inlined_call_operand.vmem [shape: f32[2,2,4,16,64], index: 1, kind: output, shape index: {}]  }
   0x1   :  { %s3_s8 = sshll.u32 %s62_s1, 4  ;;  %s9_s11 = scalar_lea.hbm %s61_s0, 4096  ;;  %s4_s8 = int_to_ptr.vmem [resolvable:$true] %s3_s8 }
   0x2   :  { %p10_p0 = scmp.ne.s32.totalorder %s61_s0, %s9_s11  ;;  %s11_s16 = scalar_lea.hbm %s61_s0, 8192 }
   0x3   :  { %p12_p1 = scmp.lt.u32.totalorder %s11_s16, %s9_s11  ;;  %p13_p2 = scmp.lt.u32.totalorder %s9_s11, %s61_s0 }
   0x5   :  { %p14_p3 = por %p13_p2, %p12_p1 }
   0x7   :  { %p15_p4 = pnand %p14_p3, %p10_p0 }
   0x9   :  { %18 = shalt.err (!%p15_p4)  }
   0xa   :  { %s19_s1 = scalar_lea.vmem %s4_s8, 4096  ;;  %p24_p6 = scmp.lt.s32.totalorder %s4_s8, %s4_s8 }
   0xb   :  { %p20_p5 = scmp.ne.s32.totalorder %s4_s8, %s19_s1  ;;  %p25_p7 = scmp.lt.s32.totalorder %s19_s1, %s19_s1 }
   0xd   :  { %p26_p8 = por %p25_p7, %p24_p6 }
   0xf   :  { %p27_p9 = pnand %p26_p8, %p20_p5 }
  0x11   :  { %30 = shalt.err (!%p27_p9)  }
  0x12   :  { %6 = dma.hbm_to_vmem [thread:$0]  %s61_s0, 4096, %s4_s8, [#allocation0] }
  0x13   :  { %31 = dma.done.wait [#allocation0], 4096  }
  0x14   :  { %32 = vsyncadd [#allocation0], 4294963200 }
  0x15   :  { %8 = vsyncpa [#allocation0], 1 }

// kernel: custom-call.1
= control target key start
LH: loop header
LB: loop body
LE: loop exit
PB: predicated region body
PF: predicated region fallthrough
CT: control target
= control target key end

     0   :  { %s59_s0 = inlined_call_operand.hbm [shape: c64[2,2,4,16,64], index: 0, kind: input, shape index: {}]   ;;  %s60_s1 = inlined_call_operand.vmem [shape: f32[2,2,4,16,64], index: 1, kind: output, shape index: {}]  }
   0x1   :  { %s2_s8 = scalar_lea.hbm %s59_s0, 4096 }
   0x2   :  { %3 = vsyncpa [#allocation0], 0  ;;  %s4_s11 = sshll.u32 %s60_s1, 4  ;;  %s34_s14 = scalar_lea.hbm %s59_s0, 8192  ;;  %s5_s11 = int_to_ptr.vmem [resolvable:$true] %s4_s11 }
   0x3   :  { %p11_p0 = scmp.ne.s32.totalorder %s2_s8, %s34_s14  ;;  %p13_p1 = scmp.lt.u32.totalorder %s2_s8, %s59_s0 }
   0x4   :  { %p14_p2 = scmp.lt.u32.totalorder %s34_s14, %s34_s14  ;;  %p16_p4 = scmp.lt.u32.totalorder %s34_s14, %s2_s8 }
   0x6   :  { %p15_p3 = por %p14_p2, %p13_p1 }
   0x8   :  { %p17_p5 = por %p16_p4, %p15_p3 }
   0xa   :  { %p18_p6 = pnand %p17_p5, %p11_p0 }
   0xc   :  { %21 = shalt.err (!%p18_p6)  }
   0xd   :  { %s22_s17 = scalar_lea.vmem %s5_s11, 4096  ;;  %p27_p8 = scmp.lt.s32.totalorder %s5_s11, %s5_s11 }
   0xe   :  { %p23_p7 = scmp.ne.s32.totalorder %s5_s11, %s22_s17  ;;  %p28_p9 = scmp.lt.s32.totalorder %s22_s17, %s22_s17 }
  0x10   :  { %p29_p10 = por %p28_p9, %p27_p8 }
  0x12   :  { %p30_p11 = pnand %p29_p10, %p23_p7 }
  0x14   :  { %33 = shalt.err (!%p30_p11)  }
  0x15   :  { %7 = dma.hbm_to_vmem [thread:$0]  %s2_s8, 4096, %s5_s11, [#allocation0] }
  0x16   :  { %35 = dma.done.wait [#allocation0], 4096  }
  0x17   :  { %36 = vsyncadd [#allocation0], 4294963200 }
  0x18   :  { %9 = vsyncpa [#allocation0], 1 }

// kernel: a_call__.1
= control target key start
LH: loop header
LB: loop body
LE: loop exit
PB: predicated region body
PF: predicated region fallthrough
CT: control target
= control target key end

     0   :  { %s719_s12 = smov 0   ;;  %s721_s13 = smov 0   ;;  %s863_s0 = inlined_call_operand.vmem [shape: f32[2,2,64,128], index: 0, kind: input, shape index: {}, may-alias: {0,3}]   ;;  %s864_s1 = inlined_call_operand.vmem [shape: f32[2,64,128], index: 1, kind: input, shape index: {}]   ;;  %s865_s2 = inlined_call_operand.vmem [shape: f32[2,64,128], index: 2, kind: input, shape index: {}]   ;;  %s866_s3 = inlined_call_operand.vmem [shape: f32[2,2,64,128], index: 3, kind: output, shape index: {}, may-alias: {0,3}]  }
   0x1   :  { %s723_s14 = smov 0   ;;  %s725_s15 = smov 0  }
   0x2   :  { %s727_s16 = smov 0  }
   0x3 LB: > { %s28_s17 = sadd.s32 1, %s687_s14  ;;  %s39_s18 = sadd.s32 1, %s691_s15  ;;  %s695_s16 = sphi %s727_s16, %s13_s16   ;;  %s691_s15 = sphi %s725_s15, %s872_s15   ;;  %s687_s14 = sphi %s723_s14, %s871_s14   ;;  %s683_s13 = sphi %s721_s13, %s870_s13   ;;  %s679_s12 = sphi %s719_s12, %s869_s12  }
   0x4   : > { %p29_p0 = scmp.ge.s32.totalorder %s28_s17, 2  ;;  %p600_p1 = scmp.ge.s32.totalorder %s695_s16, 1 }
   0x5   : > { %p217_p2 = scmp.lt.s32.totalorder %s695_s16, 5 }
   0x6   : > { %s874_s17 = smov (%p29_p0, %s28_s17), 0  ;;  %s876_s18 = smov (!%p29_p0, %s39_s18), %s691_s15 }
   0x7   : > { %p218_p3 = pnand %p600_p1, %p217_p2  ;;  %p41_p4 = scmp.ge.s32.totalorder %s876_s18, 2 }
   0x8   : > { %p280_p5 = scmp.lt.s32.totalorder (!%p218_p3), %s679_s12, 1  ;;  %p282_p6 = scmp.lt.s32.totalorder (!%p218_p3), %s683_s13, 1  ;;  %v353_v10 = vlaneseq (!%p218_p3) }
   0x9   : > { %s878_s18 = smov (%p41_p4, %s876_s18), 0  ;;  %221 = sbr.rel (%p218_p3) target bundleno = 171 (0xab), region = 32 }
   0xa   : > { %s697_s26 = smov (!%p218_p3), 127   ;;  %s698_s27 = smov (!%p218_p3), 1   ;;  %v354_v13 = vand.u32 (!%p218_p3), 127, %v353_v10 }
   0xc   : > { %v355_v16 = vand.u32 (!%p218_p3), 1, %v354_v13 }
   0xe   : > { %vm793_vm0 = vcmp.eq.s32.totalorder (!%p218_p3), %v355_v16, 0 }
  0x10   : > { %s880_s12 = smov (!%p280_p5, %s679_s12), 1  ;;  %s882_s13 = smov (!%p282_p6, %s683_s13), 1 }
  0x11   : > { %s602_s19 = sshll.u32 %s880_s12, 4  ;;  %s601_s20 = sshll.u32 %s882_s13, 3 }
  0x12   : > { %s752_s21 = sadd.s32 %s602_s19, %s601_s20  ;;  %s613_s28 = sshll.u32 %s882_s13, 6 }
  0x13   : > { %s603_s22 = sshll.u32 %s752_s21, 3  ;;  %s780_s4 = scalar_lea.vmem %s864_s1, %s613_s28 }
  0x14   : > { %s294_s25 = scalar_lea.vmem %s863_s0, %s603_s22  ;;  %s789_s7 = scalar_lea.vmem %s865_s2, %s613_s28  ;;  %v338_v19 = vld [vmem:[%s780_s4 + $0x8] sm:$0xff]  ;;  %v337_v20 = vld [vmem:[%s780_s4] sm:$0xff]  ;;  %v340_v30 = vld [vmem:[%s780_s4 + $0x18] sm:$0xff] }
  0x15   : > { %v331_v0 = vld [vmem:[%s294_s25 + $0x10] sm:$0xff]  ;;  %v329_v1 = vld [vmem:[%s294_s25] sm:$0xff]  ;;  %v332_v2 = vld [vmem:[%s294_s25 + $0x18] sm:$0xff]  ;;  %s810_s10 = scalar_lea.vmem %s866_s3, %s603_s22 }
  0x16   : > { %361 = vrot.lane.b32.xlu1 %v331_v0, %s697_s26  ;;  %357 = vrot.lane.b32.xlu0 %v329_v1, %s697_s26  ;;  %v330_v3 = vld [vmem:[%s294_s25 + $0x8] sm:$0xff]  ;;  %v762_v5 = vld [vmem:[%s294_s25 + $0x20] sm:$0xff]  ;;  %v397_v27 = vmul.f32 %v337_v20, %v329_v1  ;;  %v400_v38 = vmul.f32 %v340_v30, %v332_v2 }
  0x17   : > { %v760_v4 = vld [vmem:[%s294_s25 + $0x28] sm:$0xff]  ;;  %v766_v6 = vld [vmem:[%s294_s25 + $0x38] sm:$0xff]  ;;  %v768_v7 = vld [vmem:[%s294_s25 + $0x30] sm:$0xff]  ;;  %v398_v25 = vmul.f32 %v338_v19, %v330_v3 }
  0x18   : > { %v346_v22 = vld [vmem:[%s789_s7 + $0x8] sm:$0xff]  ;;  %v345_v23 = vld [vmem:[%s789_s7] sm:$0xff]  ;;  %v339_v31 = vld [vmem:[%s780_s4 + $0x10] sm:$0xff] }
  0x19   : > { %v348_v34 = vld [vmem:[%s789_s7 + $0x18] sm:$0xff]  ;;  %v347_v35 = vld [vmem:[%s789_s7 + $0x10] sm:$0xff]  ;;  %v399_v40 = vmul.f32 %v339_v31, %v331_v0  ;;  %v342_v44 = vld [vmem:[%s780_s4 + $0x28] sm:$0xff] }
  0x1a   : > { %363 = vrot.lane.b32.xlu1 %v332_v2, %s697_s26  ;;  %359 = vrot.lane.b32.xlu0 %v330_v3, %s697_s26  ;;  %v341_v45 = vld [vmem:[%s780_s4 + $0x20] sm:$0xff]  ;;  %v350_v48 = vld [vmem:[%s789_s7 + $0x28] sm:$0xff]  ;;  %v402_v52 = vmul.f32 %v342_v44, %v760_v4 }
  0x1b   : > { %v349_v49 = vld [vmem:[%s789_s7 + $0x20] sm:$0xff]  ;;  %v401_v54 = vmul.f32 %v341_v45, %v762_v5  ;;  %v344_v58 = vld [vmem:[%s780_s4 + $0x38] sm:$0xff]  ;;  %v343_v59 = vld [vmem:[%s780_s4 + $0x30] sm:$0xff] }
  0x1c   : > { %v352_v62 = vld [vmem:[%s789_s7 + $0x38] sm:$0xff]  ;;  %v351_v63 = vld [vmem:[%s789_s7 + $0x30] sm:$0xff] }
  0x1e   : > { %367 = vrot.lane.b32.xlu1 %v760_v4, %s697_s26  ;;  %365 = vrot.lane.b32.xlu0 %v762_v5, %s697_s26 }
  0x22   : > { %371 = vrot.lane.b32.xlu1 %v766_v6, %s697_s26  ;;  %369 = vrot.lane.b32.xlu0 %v768_v7, %s697_s26 }
  0x26   : > { %375 = vrot.lane.b32.xlu1 %v330_v3, %s698_s27  ;;  %373 = vrot.lane.b32.xlu0 %v329_v1, %s698_s27 }
  0x2a   : > { %379 = vrot.lane.b32.xlu1 %v332_v2, %s698_s27  ;;  %377 = vrot.lane.b32.xlu0 %v331_v0, %s698_s27  ;;  %v404_v2 = vmul.f32 %v344_v58, %v766_v6 }
  0x2e   : > { %383 = vrot.lane.b32.xlu1 %v760_v4, %s698_s27  ;;  %381 = vrot.lane.b32.xlu0 %v762_v5, %s698_s27  ;;  %v403_v4 = vmul.f32 %v343_v59, %v768_v7 }
  0x32   : > { %387 = vrot.lane.b32.xlu1 %v766_v6, %s698_s27  ;;  %385 = vrot.lane.b32.xlu0 %v768_v7, %s698_s27 }
  0x88   : > { %v362_v8 = vpop.permute.xlu1 %361  ;;  %v358_v9 = vpop.permute.xlu0 %357 }
  0x8c   : > { %v364_v11 = vpop.permute.xlu1 %363  ;;  %v360_v12 = vpop.permute.xlu0 %359 }
  0x90   : > { %v368_v14 = vpop.permute.xlu1 %367  ;;  %v366_v15 = vpop.permute.xlu0 %365 }
  0x94   : > { %v782_v17 = vpop.permute.xlu1 %371  ;;  %v784_v18 = vpop.permute.xlu0 %369 }
  0x98   : > { %v376_v24 = vpop.permute.xlu1 %375  ;;  %v374_v26 = vpop.permute.xlu0 %373 }
  0x99   : > { %v390_v28 = vsel %vm793_vm0, %v360_v12, %v376_v24  ;;  %v389_v29 = vsel %vm793_vm0, %v358_v9, %v374_v26 }
  0x9a   : > { %v406_v32 = vmul.f32 %v390_v28, %v346_v22  ;;  %v405_v33 = vmul.f32 %v389_v29, %v345_v23 }
  0x9c   : > { %v414_v36 = vadd.f32 %v406_v32, %v398_v25  ;;  %v413_v37 = vadd.f32 %v405_v33, %v397_v27  ;;  %v380_v39 = vpop.permute.xlu1 %379  ;;  %v378_v41 = vpop.permute.xlu0 %377 }
  0x9d   : > { %v392_v42 = vsel %vm793_vm0, %v364_v11, %v380_v39  ;;  %v391_v43 = vsel %vm793_vm0, %v362_v8, %v378_v41 }
  0x9e   : > { %422 = vst [vmem:[%s810_s10 + $0x8] sm:$0xff] %v414_v36  ;;  %421 = vst [vmem:[%s810_s10] sm:$0xff] %v413_v37  ;;  %v408_v46 = vmul.f32 %v392_v42, %v348_v34  ;;  %v407_v47 = vmul.f32 %v391_v43, %v347_v35 }
  0xa0   : > { %v416_v50 = vadd.f32 %v408_v46, %v400_v38  ;;  %v415_v51 = vadd.f32 %v407_v47, %v399_v40  ;;  %v384_v53 = vpop.permute.xlu1 %383  ;;  %v382_v55 = vpop.permute.xlu0 %381 }
  0xa1   : > { %v394_v56 = vsel %vm793_vm0, %v368_v14, %v384_v53  ;;  %v393_v57 = vsel %vm793_vm0, %v366_v15, %v382_v55 }
  0xa2   : > { %424 = vst [vmem:[%s810_s10 + $0x18] sm:$0xff] %v416_v50  ;;  %423 = vst [vmem:[%s810_s10 + $0x10] sm:$0xff] %v415_v51  ;;  %v410_v60 = vmul.f32 %v394_v56, %v350_v48  ;;  %v409_v61 = vmul.f32 %v393_v57, %v349_v49 }
  0xa4   : > { %v418_v0 = vadd.f32 %v410_v60, %v402_v52  ;;  %v417_v1 = vadd.f32 %v409_v61, %v401_v54  ;;  %v388_v3 = vpop.permute.xlu1 %387  ;;  %v386_v5 = vpop.permute.xlu0 %385 }
  0xa5   : > { %v396_v8 = vsel %vm793_vm0, %v782_v17, %v388_v3  ;;  %v395_v9 = vsel %vm793_vm0, %v784_v18, %v386_v5 }
  0xa6   : > { %426 = vst [vmem:[%s810_s10 + $0x28] sm:$0xff] %v418_v0  ;;  %425 = vst [vmem:[%s810_s10 + $0x20] sm:$0xff] %v417_v1  ;;  %v412_v10 = vmul.f32 %v396_v8, %v352_v62  ;;  %v411_v11 = vmul.f32 %v395_v9, %v351_v63 }
  0xa8   : > { %v420_v12 = vadd.f32 %v412_v10, %v404_v2  ;;  %v419_v13 = vadd.f32 %v411_v11, %v403_v4 }
  0xaa   : > { %428 = vst [vmem:[%s810_s10 + $0x38] sm:$0xff] %v420_v12  ;;  %427 = vst [vmem:[%s810_s10 + $0x30] sm:$0xff] %v419_v13 }
  0xab PF: > { %s13_s16 = sadd.s32 1, %s695_s16   ;;  %s869_s12 = smov %s687_s14 }
  0xac   : > { %p10_p7 = scmp.ge.s32.totalorder %s13_s16, 6   ;;  %s870_s13 = smov %s691_s15 }
  0xad   : > { %s871_s14 = smov %s874_s17  ;;  %s872_s15 = smov %s878_s18 }
  0xae   :  { %12 = sbr.rel (!%p10_p7) target bundleno = 3 (0x3), region = 68 }

// kernel: custom-call.2
= control target key start
LH: loop header
LB: loop body
LE: loop exit
PB: predicated region body
PF: predicated region fallthrough
CT: control target
= control target key end

     0   :  { %s3212_s0 = inlined_call_operand.vmem [shape: f32[2,2,4,16,64], index: 0, kind: input, shape index: {}]   ;;  %s3213_s2 = inlined_call_operand.vmem [shape: c64[2,2,4,16,64], index: 2, kind: output, shape index: {}]   ;;  %s3214_s1 = inlined_call_operand.vmem [shape: f32[2,2,4,16,64], index: 1, kind: input, shape index: {}]  }
   0x1   :  { %v5_v0 = vld [vmem:[%s3212_s0] sm:$0xff]  ;;  %v1152_v1 = vld [vmem:[%s3212_s0 + $0x8] sm:$0xff]  ;;  %v1154_v2 = vld [vmem:[%s3212_s0 + $0x10] sm:$0xff] }
   0x2   :  { %6 = vst [vmem:[%s3213_s2] sm:$0xff] %v5_v0  ;;  %1153 = vst [vmem:[%s3213_s2 + $0x8] sm:$0xff] %v1152_v1  ;;  %v1156_v3 = vld [vmem:[%s3212_s0 + $0x18] sm:$0xff]  ;;  %v1158_v4 = vld [vmem:[%s3212_s0 + $0x20] sm:$0xff] }
   0x3   :  { %1155 = vst [vmem:[%s3213_s2 + $0x10] sm:$0xff] %v1154_v2  ;;  %v1160_v5 = vld [vmem:[%s3212_s0 + $0x28] sm:$0xff]  ;;  %1157 = vst [vmem:[%s3213_s2 + $0x18] sm:$0xff] %v1156_v3  ;;  %v1162_v6 = vld [vmem:[%s3212_s0 + $0x30] sm:$0xff] }
   0x4   :  { %1159 = vst [vmem:[%s3213_s2 + $0x20] sm:$0xff] %v1158_v4  ;;  %1161 = vst [vmem:[%s3213_s2 + $0x28] sm:$0xff] %v1160_v5  ;;  %v1164_v7 = vld [vmem:[%s3212_s0 + $0x38] sm:$0xff]  ;;  %v1166_v8 = vld [vmem:[%s3212_s0 + $0x40] sm:$0xff] }
   0x5   :  { %1163 = vst [vmem:[%s3213_s2 + $0x30] sm:$0xff] %v1162_v6  ;;  %1165 = vst [vmem:[%s3213_s2 + $0x38] sm:$0xff] %v1164_v7  ;;  %v1168_v9 = vld [vmem:[%s3212_s0 + $0x48] sm:$0xff]  ;;  %v1170_v10 = vld [vmem:[%s3212_s0 + $0x50] sm:$0xff] }
   0x6   :  { %1167 = vst [vmem:[%s3213_s2 + $0x40] sm:$0xff] %v1166_v8  ;;  %v1172_v11 = vld [vmem:[%s3212_s0 + $0x58] sm:$0xff]  ;;  %1169 = vst [vmem:[%s3213_s2 + $0x48] sm:$0xff] %v1168_v9  ;;  %v1174_v12 = vld [vmem:[%s3212_s0 + $0x60] sm:$0xff] }
   0x7   :  { %1171 = vst [vmem:[%s3213_s2 + $0x50] sm:$0xff] %v1170_v10  ;;  %1173 = vst [vmem:[%s3213_s2 + $0x58] sm:$0xff] %v1172_v11  ;;  %v1176_v13 = vld [vmem:[%s3212_s0 + $0x68] sm:$0xff]  ;;  %v1178_v14 = vld [vmem:[%s3212_s0 + $0x70] sm:$0xff] }
   0x8   :  { %1175 = vst [vmem:[%s3213_s2 + $0x60] sm:$0xff] %v1174_v12  ;;  %1177 = vst [vmem:[%s3213_s2 + $0x68] sm:$0xff] %v1176_v13  ;;  %v1180_v15 = vld [vmem:[%s3212_s0 + $0x78] sm:$0xff]  ;;  %v1182_v16 = vld [vmem:[%s3212_s0 + $0x80] sm:$0xff] }
   0x9   :  { %1179 = vst [vmem:[%s3213_s2 + $0x70] sm:$0xff] %v1178_v14  ;;  %v1184_v17 = vld [vmem:[%s3212_s0 + $0x88] sm:$0xff]  ;;  %1181 = vst [vmem:[%s3213_s2 + $0x78] sm:$0xff] %v1180_v15  ;;  %v1186_v18 = vld [vmem:[%s3212_s0 + $0x90] sm:$0xff] }
   0xa   :  { %1183 = vst [vmem:[%s3213_s2 + $0x80] sm:$0xff] %v1182_v16  ;;  %1185 = vst [vmem:[%s3213_s2 + $0x88] sm:$0xff] %v1184_v17  ;;  %v1188_v19 = vld [vmem:[%s3212_s0 + $0x98] sm:$0xff]  ;;  %v1190_v20 = vld [vmem:[%s3212_s0 + $0xa0] sm:$0xff] }
   0xb   :  { %1187 = vst [vmem:[%s3213_s2 + $0x90] sm:$0xff] %v1186_v18  ;;  %1189 = vst [vmem:[%s3213_s2 + $0x98] sm:$0xff] %v1188_v19  ;;  %v1192_v21 = vld [vmem:[%s3212_s0 + $0xa8] sm:$0xff]  ;;  %v1194_v22 = vld [vmem:[%s3212_s0 + $0xb0] sm:$0xff] }
   0xc   :  { %1191 = vst [vmem:[%s3213_s2 + $0xa0] sm:$0xff] %v1190_v20  ;;  %v1196_v23 = vld [vmem:[%s3212_s0 + $0xb8] sm:$0xff]  ;;  %1193 = vst [vmem:[%s3213_s2 + $0xa8] sm:$0xff] %v1192_v21  ;;  %v1198_v24 = vld [vmem:[%s3212_s0 + $0xc0] sm:$0xff] }
   0xd   :  { %1195 = vst [vmem:[%s3213_s2 + $0xb0] sm:$0xff] %v1194_v22  ;;  %1197 = vst [vmem:[%s3213_s2 + $0xb8] sm:$0xff] %v1196_v23  ;;  %v1200_v25 = vld [vmem:[%s3212_s0 + $0xc8] sm:$0xff]  ;;  %v1202_v26 = vld [vmem:[%s3212_s0 + $0xd0] sm:$0xff] }
   0xe   :  { %1199 = vst [vmem:[%s3213_s2 + $0xc0] sm:$0xff] %v1198_v24  ;;  %1201 = vst [vmem:[%s3213_s2 + $0xc8] sm:$0xff] %v1200_v25  ;;  %v1204_v27 = vld [vmem:[%s3212_s0 + $0xd8] sm:$0xff]  ;;  %v1206_v28 = vld [vmem:[%s3212_s0 + $0xe0] sm:$0xff] }
   0xf   :  { %1203 = vst [vmem:[%s3213_s2 + $0xd0] sm:$0xff] %v1202_v26  ;;  %v1208_v29 = vld [vmem:[%s3212_s0 + $0xe8] sm:$0xff]  ;;  %1205 = vst [vmem:[%s3213_s2 + $0xd8] sm:$0xff] %v1204_v27  ;;  %v1210_v30 = vld [vmem:[%s3212_s0 + $0xf0] sm:$0xff] }
  0x10   :  { %1207 = vst [vmem:[%s3213_s2 + $0xe0] sm:$0xff] %v1206_v28  ;;  %1209 = vst [vmem:[%s3213_s2 + $0xe8] sm:$0xff] %v1208_v29  ;;  %v1212_v31 = vld [vmem:[%s3212_s0 + $0xf8] sm:$0xff]  ;;  %v1214_v32 = vld [vmem:[%s3212_s0 + $0x100] sm:$0xff] }
  0x11   :  { %1211 = vst [vmem:[%s3213_s2 + $0xf0] sm:$0xff] %v1210_v30  ;;  %1213 = vst [vmem:[%s3213_s2 + $0xf8] sm:$0xff] %v1212_v31  ;;  %v1216_v33 = vld [vmem:[%s3212_s0 + $0x108] sm:$0xff]  ;;  %v1218_v34 = vld [vmem:[%s3212_s0 + $0x110] sm:$0xff] }
  0x12   :  { %1215 = vst [vmem:[%s3213_s2 + $0x100] sm:$0xff] %v1214_v32  ;;  %v1220_v35 = vld [vmem:[%s3212_s0 + $0x118] sm:$0xff]  ;;  %1217 = vst [vmem:[%s3213_s2 + $0x108] sm:$0xff] %v1216_v33  ;;  %v1222_v36 = vld [vmem:[%s3212_s0 + $0x120] sm:$0xff] }
  0x13   :  { %1219 = vst [vmem:[%s3213_s2 + $0x110] sm:$0xff] %v1218_v34  ;;  %1221 = vst [vmem:[%s3213_s2 + $0x118] sm:$0xff] %v1220_v35  ;;  %v1224_v37 = vld [vmem:[%s3212_s0 + $0x128] sm:$0xff]  ;;  %v1226_v38 = vld [vmem:[%s3212_s0 + $0x130] sm:$0xff] }
  0x14   :  { %1223 = vst [vmem:[%s3213_s2 + $0x120] sm:$0xff] %v1222_v36  ;;  %1225 = vst [vmem:[%s3213_s2 + $0x128] sm:$0xff] %v1224_v37  ;;  %v1228_v39 = vld [vmem:[%s3212_s0 + $0x138] sm:$0xff]  ;;  %v1230_v40 = vld [vmem:[%s3212_s0 + $0x140] sm:$0xff] }
  0x15   :  { %1227 = vst [vmem:[%s3213_s2 + $0x130] sm:$0xff] %v1226_v38  ;;  %v1232_v41 = vld [vmem:[%s3212_s0 + $0x148] sm:$0xff]  ;;  %1229 = vst [vmem:[%s3213_s2 + $0x138] sm:$0xff] %v1228_v39  ;;  %v1234_v42 = vld [vmem:[%s3212_s0 + $0x150] sm:$0xff] }
  0x16   :  { %1231 = vst [vmem:[%s3213_s2 + $0x140] sm:$0xff] %v1230_v40  ;;  %1233 = vst [vmem:[%s3213_s2 + $0x148] sm:$0xff] %v1232_v41  ;;  %v1236_v43 = vld [vmem:[%s3212_s0 + $0x158] sm:$0xff]  ;;  %v1238_v44 = vld [vmem:[%s3212_s0 + $0x160] sm:$0xff] }
  0x17   :  { %1235 = vst [vmem:[%s3213_s2 + $0x150] sm:$0xff] %v1234_v42  ;;  %1237 = vst [vmem:[%s3213_s2 + $0x158] sm:$0xff] %v1236_v43  ;;  %v1240_v45 = vld [vmem:[%s3212_s0 + $0x168] sm:$0xff]  ;;  %v1242_v46 = vld [vmem:[%s3212_s0 + $0x170] sm:$0xff] }
  0x18   :  { %1239 = vst [vmem:[%s3213_s2 + $0x160] sm:$0xff] %v1238_v44  ;;  %v1244_v47 = vld [vmem:[%s3212_s0 + $0x178] sm:$0xff]  ;;  %1241 = vst [vmem:[%s3213_s2 + $0x168] sm:$0xff] %v1240_v45  ;;  %v1246_v48 = vld [vmem:[%s3212_s0 + $0x180] sm:$0xff] }
  0x19   :  { %1243 = vst [vmem:[%s3213_s2 + $0x170] sm:$0xff] %v1242_v46  ;;  %1245 = vst [vmem:[%s3213_s2 + $0x178] sm:$0xff] %v1244_v47  ;;  %v1248_v49 = vld [vmem:[%s3212_s0 + $0x188] sm:$0xff]  ;;  %v1250_v50 = vld [vmem:[%s3212_s0 + $0x190] sm:$0xff] }
  0x1a   :  { %1247 = vst [vmem:[%s3213_s2 + $0x180] sm:$0xff] %v1246_v48  ;;  %1249 = vst [vmem:[%s3213_s2 + $0x188] sm:$0xff] %v1248_v49  ;;  %v1252_v51 = vld [vmem:[%s3212_s0 + $0x198] sm:$0xff]  ;;  %v1254_v52 = vld [vmem:[%s3212_s0 + $0x1a0] sm:$0xff] }
  0x1b   :  { %1251 = vst [vmem:[%s3213_s2 + $0x190] sm:$0xff] %v1250_v50  ;;  %v1256_v53 = vld [vmem:[%s3212_s0 + $0x1a8] sm:$0xff]  ;;  %1253 = vst [vmem:[%s3213_s2 + $0x198] sm:$0xff] %v1252_v51  ;;  %v1258_v54 = vld [vmem:[%s3212_s0 + $0x1b0] sm:$0xff] }
  0x1c   :  { %1255 = vst [vmem:[%s3213_s2 + $0x1a0] sm:$0xff] %v1254_v52  ;;  %1257 = vst [vmem:[%s3213_s2 + $0x1a8] sm:$0xff] %v1256_v53  ;;  %v1260_v55 = vld [vmem:[%s3212_s0 + $0x1b8] sm:$0xff]  ;;  %v1262_v56 = vld [vmem:[%s3212_s0 + $0x1c0] sm:$0xff] }
  0x1d   :  { %1259 = vst [vmem:[%s3213_s2 + $0x1b0] sm:$0xff] %v1258_v54  ;;  %1261 = vst [vmem:[%s3213_s2 + $0x1b8] sm:$0xff] %v1260_v55  ;;  %v1264_v57 = vld [vmem:[%s3212_s0 + $0x1c8] sm:$0xff]  ;;  %v1266_v58 = vld [vmem:[%s3212_s0 + $0x1d0] sm:$0xff] }
  0x1e   :  { %1263 = vst [vmem:[%s3213_s2 + $0x1c0] sm:$0xff] %v1262_v56  ;;  %v1268_v59 = vld [vmem:[%s3212_s0 + $0x1d8] sm:$0xff]  ;;  %1265 = vst [vmem:[%s3213_s2 + $0x1c8] sm:$0xff] %v1264_v57  ;;  %v1270_v60 = vld [vmem:[%s3212_s0 + $0x1e0] sm:$0xff] }
  0x1f   :  { %1267 = vst [vmem:[%s3213_s2 + $0x1d0] sm:$0xff] %v1266_v58  ;;  %1269 = vst [vmem:[%s3213_s2 + $0x1d8] sm:$0xff] %v1268_v59  ;;  %v1272_v61 = vld [vmem:[%s3212_s0 + $0x1e8] sm:$0xff]  ;;  %v1274_v62 = vld [vmem:[%s3212_s0 + $0x1f0] sm:$0xff] }
  0x20   :  { %1271 = vst [vmem:[%s3213_s2 + $0x1e0] sm:$0xff] %v1270_v60  ;;  %1273 = vst [vmem:[%s3213_s2 + $0x1e8] sm:$0xff] %v1272_v61  ;;  %v1276_v63 = vld [vmem:[%s3212_s0 + $0x1f8] sm:$0xff]  ;;  %v1278_v0 = vld [vmem:[%s3212_s0 + $0x200] sm:$0xff] }
  0x21   :  { %1275 = vst [vmem:[%s3213_s2 + $0x1f0] sm:$0xff] %v1274_v62  ;;  %v1280_v1 = vld [vmem:[%s3212_s0 + $0x208] sm:$0xff]  ;;  %1277 = vst [vmem:[%s3213_s2 + $0x1f8] sm:$0xff] %v1276_v63  ;;  %v1282_v2 = vld [vmem:[%s3212_s0 + $0x210] sm:$0xff] }
  0x22   :  { %1279 = vst [vmem:[%s3213_s2 + $0x200] sm:$0xff] %v1278_v0  ;;  %1281 = vst [vmem:[%s3213_s2 + $0x208] sm:$0xff] %v1280_v1  ;;  %v1284_v3 = vld [vmem:[%s3212_s0 + $0x218] sm:$0xff]  ;;  %v1286_v4 = vld [vmem:[%s3212_s0 + $0x220] sm:$0xff] }
  0x23   :  { %1283 = vst [vmem:[%s3213_s2 + $0x210] sm:$0xff] %v1282_v2  ;;  %1285 = vst [vmem:[%s3213_s2 + $0x218] sm:$0xff] %v1284_v3  ;;  %v1288_v5 = vld [vmem:[%s3212_s0 + $0x228] sm:$0xff]  ;;  %v1290_v6 = vld [vmem:[%s3212_s0 + $0x230] sm:$0xff] }
  0x24   :  { %1287 = vst [vmem:[%s3213_s2 + $0x220] sm:$0xff] %v1286_v4  ;;  %v1292_v7 = vld [vmem:[%s3212_s0 + $0x238] sm:$0xff]  ;;  %1289 = vst [vmem:[%s3213_s2 + $0x228] sm:$0xff] %v1288_v5  ;;  %v1294_v8 = vld [vmem:[%s3212_s0 + $0x240] sm:$0xff] }
  0x25   :  { %1291 = vst [vmem:[%s3213_s2 + $0x230] sm:$0xff] %v1290_v6  ;;  %1293 = vst [vmem:[%s3213_s2 + $0x238] sm:$0xff] %v1292_v7  ;;  %v1296_v9 = vld [vmem:[%s3212_s0 + $0x248] sm:$0xff]  ;;  %v1298_v10 = vld [vmem:[%s3212_s0 + $0x250] sm:$0xff] }
  0x26   :  { %1295 = vst [vmem:[%s3213_s2 + $0x240] sm:$0xff] %v1294_v8  ;;  %1297 = vst [vmem:[%s3213_s2 + $0x248] sm:$0xff] %v1296_v9  ;;  %v1300_v11 = vld [vmem:[%s3212_s0 + $0x258] sm:$0xff]  ;;  %v1302_v12 = vld [vmem:[%s3212_s0 + $0x260] sm:$0xff] }
  0x27   :  { %1299 = vst [vmem:[%s3213_s2 + $0x250] sm:$0xff] %v1298_v10  ;;  %v1304_v13 = vld [vmem:[%s3212_s0 + $0x268] sm:$0xff]  ;;  %1301 = vst [vmem:[%s3213_s2 + $0x258] sm:$0xff] %v1300_v11  ;;  %v1306_v14 = vld [vmem:[%s3212_s0 + $0x270] sm:$0xff] }
  0x28   :  { %1303 = vst [vmem:[%s3213_s2 + $0x260] sm:$0xff] %v1302_v12  ;;  %1305 = vst [vmem:[%s3213_s2 + $0x268] sm:$0xff] %v1304_v13  ;;  %v1308_v15 = vld [vmem:[%s3212_s0 + $0x278] sm:$0xff]  ;;  %v1310_v16 = vld [vmem:[%s3212_s0 + $0x280] sm:$0xff] }
  0x29   :  { %1307 = vst [vmem:[%s3213_s2 + $0x270] sm:$0xff] %v1306_v14  ;;  %1309 = vst [vmem:[%s3213_s2 + $0x278] sm:$0xff] %v1308_v15  ;;  %v1312_v17 = vld [vmem:[%s3212_s0 + $0x288] sm:$0xff]  ;;  %v1314_v18 = vld [vmem:[%s3212_s0 + $0x290] sm:$0xff] }
  0x2a   :  { %1311 = vst [vmem:[%s3213_s2 + $0x280] sm:$0xff] %v1310_v16  ;;  %v1316_v19 = vld [vmem:[%s3212_s0 + $0x298] sm:$0xff]  ;;  %1313 = vst [vmem:[%s3213_s2 + $0x288] sm:$0xff] %v1312_v17  ;;  %v1318_v20 = vld [vmem:[%s3212_s0 + $0x2a0] sm:$0xff] }
  0x2b   :  { %1315 = vst [vmem:[%s3213_s2 + $0x290] sm:$0xff] %v1314_v18  ;;  %1317 = vst [vmem:[%s3213_s2 + $0x298] sm:$0xff] %v1316_v19  ;;  %v1320_v21 = vld [vmem:[%s3212_s0 + $0x2a8] sm:$0xff]  ;;  %v1322_v22 = vld [vmem:[%s3212_s0 + $0x2b0] sm:$0xff] }
  0x2c   :  { %1319 = vst [vmem:[%s3213_s2 + $0x2a0] sm:$0xff] %v1318_v20  ;;  %1321 = vst [vmem:[%s3213_s2 + $0x2a8] sm:$0xff] %v1320_v21  ;;  %v1324_v23 = vld [vmem:[%s3212_s0 + $0x2b8] sm:$0xff]  ;;  %v1326_v24 = vld [vmem:[%s3212_s0 + $0x2c0] sm:$0xff] }
  0x2d   :  { %1323 = vst [vmem:[%s3213_s2 + $0x2b0] sm:$0xff] %v1322_v22  ;;  %v1328_v25 = vld [vmem:[%s3212_s0 + $0x2c8] sm:$0xff]  ;;  %1325 = vst [vmem:[%s3213_s2 + $0x2b8] sm:$0xff] %v1324_v23  ;;  %v1330_v26 = vld [vmem:[%s3212_s0 + $0x2d0] sm:$0xff] }
  0x2e   :  { %1327 = vst [vmem:[%s3213_s2 + $0x2c0] sm:$0xff] %v1326_v24  ;;  %1329 = vst [vmem:[%s3213_s2 + $0x2c8] sm:$0xff] %v1328_v25  ;;  %v1332_v27 = vld [vmem:[%s3212_s0 + $0x2d8] sm:$0xff]  ;;  %v1334_v28 = vld [vmem:[%s3212_s0 + $0x2e0] sm:$0xff] }
  0x2f   :  { %1331 = vst [vmem:[%s3213_s2 + $0x2d0] sm:$0xff] %v1330_v26  ;;  %1333 = vst [vmem:[%s3213_s2 + $0x2d8] sm:$0xff] %v1332_v27  ;;  %v1336_v29 = vld [vmem:[%s3212_s0 + $0x2e8] sm:$0xff]  ;;  %v1338_v30 = vld [vmem:[%s3212_s0 + $0x2f0] sm:$0xff] }
  0x30   :  { %1335 = vst [vmem:[%s3213_s2 + $0x2e0] sm:$0xff] %v1334_v28  ;;  %v1340_v31 = vld [vmem:[%s3212_s0 + $0x2f8] sm:$0xff]  ;;  %1337 = vst [vmem:[%s3213_s2 + $0x2e8] sm:$0xff] %v1336_v29  ;;  %v1342_v32 = vld [vmem:[%s3212_s0 + $0x300] sm:$0xff] }
  0x31   :  { %1339 = vst [vmem:[%s3213_s2 + $0x2f0] sm:$0xff] %v1338_v30  ;;  %1341 = vst [vmem:[%s3213_s2 + $0x2f8] sm:$0xff] %v1340_v31  ;;  %v1344_v33 = vld [vmem:[%s3212_s0 + $0x308] sm:$0xff]  ;;  %v1346_v34 = vld [vmem:[%s3212_s0 + $0x310] sm:$0xff] }
  0x32   :  { %1343 = vst [vmem:[%s3213_s2 + $0x300] sm:$0xff] %v1342_v32  ;;  %1345 = vst [vmem:[%s3213_s2 + $0x308] sm:$0xff] %v1344_v33  ;;  %v1348_v35 = vld [vmem:[%s3212_s0 + $0x318] sm:$0xff]  ;;  %v1350_v36 = vld [vmem:[%s3212_s0 + $0x320] sm:$0xff] }
  0x33   :  { %1347 = vst [vmem:[%s3213_s2 + $0x310] sm:$0xff] %v1346_v34  ;;  %v1352_v37 = vld [vmem:[%s3212_s0 + $0x328] sm:$0xff]  ;;  %1349 = vst [vmem:[%s3213_s2 + $0x318] sm:$0xff] %v1348_v35  ;;  %v1354_v38 = vld [vmem:[%s3212_s0 + $0x330] sm:$0xff] }
  0x34   :  { %1351 = vst [vmem:[%s3213_s2 + $0x320] sm:$0xff] %v1350_v36  ;;  %1353 = vst [vmem:[%s3213_s2 + $0x328] sm:$0xff] %v1352_v37  ;;  %v1356_v39 = vld [vmem:[%s3212_s0 + $0x338] sm:$0xff]  ;;  %v1358_v40 = vld [vmem:[%s3212_s0 + $0x340] sm:$0xff] }
  0x35   :  { %1355 = vst [vmem:[%s3213_s2 + $0x330] sm:$0xff] %v1354_v38  ;;  %1357 = vst [vmem:[%s3213_s2 + $0x338] sm:$0xff] %v1356_v39  ;;  %v1360_v41 = vld [vmem:[%s3212_s0 + $0x348] sm:$0xff]  ;;  %v1362_v42 = vld [vmem:[%s3212_s0 + $0x350] sm:$0xff] }
  0x36   :  { %1359 = vst [vmem:[%s3213_s2 + $0x340] sm:$0xff] %v1358_v40  ;;  %v1364_v43 = vld [vmem:[%s3212_s0 + $0x358] sm:$0xff]  ;;  %1361 = vst [vmem:[%s3213_s2 + $0x348] sm:$0xff] %v1360_v41  ;;  %v1366_v44 = vld [vmem:[%s3212_s0 + $0x360] sm:$0xff] }
  0x37   :  { %1363 = vst [vmem:[%s3213_s2 + $0x350] sm:$0xff] %v1362_v42  ;;  %1365 = vst [vmem:[%s3213_s2 + $0x358] sm:$0xff] %v1364_v43  ;;  %v1368_v45 = vld [vmem:[%s3212_s0 + $0x368] sm:$0xff]  ;;  %v1370_v46 = vld [vmem:[%s3212_s0 + $0x370] sm:$0xff] }
  0x38   :  { %1367 = vst [vmem:[%s3213_s2 + $0x360] sm:$0xff] %v1366_v44  ;;  %1369 = vst [vmem:[%s3213_s2 + $0x368] sm:$0xff] %v1368_v45  ;;  %v1372_v47 = vld [vmem:[%s3212_s0 + $0x378] sm:$0xff]  ;;  %v1374_v48 = vld [vmem:[%s3212_s0 + $0x380] sm:$0xff] }
  0x39   :  { %1371 = vst [vmem:[%s3213_s2 + $0x370] sm:$0xff] %v1370_v46  ;;  %v1376_v49 = vld [vmem:[%s3212_s0 + $0x388] sm:$0xff]  ;;  %1373 = vst [vmem:[%s3213_s2 + $0x378] sm:$0xff] %v1372_v47  ;;  %v1378_v50 = vld [vmem:[%s3212_s0 + $0x390] sm:$0xff] }
  0x3a   :  { %1375 = vst [vmem:[%s3213_s2 + $0x380] sm:$0xff] %v1374_v48  ;;  %1377 = vst [vmem:[%s3213_s2 + $0x388] sm:$0xff] %v1376_v49  ;;  %v1380_v51 = vld [vmem:[%s3212_s0 + $0x398] sm:$0xff]  ;;  %v1382_v52 = vld [vmem:[%s3212_s0 + $0x3a0] sm:$0xff] }
  0x3b   :  { %1379 = vst [vmem:[%s3213_s2 + $0x390] sm:$0xff] %v1378_v50  ;;  %1381 = vst [vmem:[%s3213_s2 + $0x398] sm:$0xff] %v1380_v51  ;;  %v1384_v53 = vld [vmem:[%s3212_s0 + $0x3a8] sm:$0xff]  ;;  %v1386_v54 = vld [vmem:[%s3212_s0 + $0x3b0] sm:$0xff] }
  0x3c   :  { %1383 = vst [vmem:[%s3213_s2 + $0x3a0] sm:$0xff] %v1382_v52  ;;  %v1388_v55 = vld [vmem:[%s3212_s0 + $0x3b8] sm:$0xff]  ;;  %1385 = vst [vmem:[%s3213_s2 + $0x3a8] sm:$0xff] %v1384_v53  ;;  %v1390_v56 = vld [vmem:[%s3212_s0 + $0x3c0] sm:$0xff] }
  0x3d   :  { %1387 = vst [vmem:[%s3213_s2 + $0x3b0] sm:$0xff] %v1386_v54  ;;  %1389 = vst [vmem:[%s3213_s2 + $0x3b8] sm:$0xff] %v1388_v55  ;;  %v1392_v57 = vld [vmem:[%s3212_s0 + $0x3c8] sm:$0xff]  ;;  %v1394_v58 = vld [vmem:[%s3212_s0 + $0x3d0] sm:$0xff] }
  0x3e   :  { %1391 = vst [vmem:[%s3213_s2 + $0x3c0] sm:$0xff] %v1390_v56  ;;  %1393 = vst [vmem:[%s3213_s2 + $0x3c8] sm:$0xff] %v1392_v57  ;;  %v1396_v59 = vld [vmem:[%s3212_s0 + $0x3d8] sm:$0xff]  ;;  %v1398_v60 = vld [vmem:[%s3212_s0 + $0x3e0] sm:$0xff] }
  0x3f   :  { %1395 = vst [vmem:[%s3213_s2 + $0x3d0] sm:$0xff] %v1394_v58  ;;  %v1400_v61 = vld [vmem:[%s3212_s0 + $0x3e8] sm:$0xff]  ;;  %1397 = vst [vmem:[%s3213_s2 + $0x3d8] sm:$0xff] %v1396_v59  ;;  %v1402_v62 = vld [vmem:[%s3212_s0 + $0x3f0] sm:$0xff] }
  0x40   :  { %1399 = vst [vmem:[%s3213_s2 + $0x3e0] sm:$0xff] %v1398_v60  ;;  %1401 = vst [vmem:[%s3213_s2 + $0x3e8] sm:$0xff] %v1400_v61  ;;  %v1404_v63 = vld [vmem:[%s3212_s0 + $0x3f8] sm:$0xff]  ;;  %v515_v0 = vld [vmem:[%s3214_s1] sm:$0xff] }
  0x41   :  { %1403 = vst [vmem:[%s3213_s2 + $0x3f0] sm:$0xff] %v1402_v62  ;;  %1405 = vst [vmem:[%s3213_s2 + $0x3f8] sm:$0xff] %v1404_v63  ;;  %v1407_v1 = vld [vmem:[%s3214_s1 + $0x8] sm:$0xff]  ;;  %v1409_v2 = vld [vmem:[%s3214_s1 + $0x10] sm:$0xff] }
  0x42   :  { %1406 = vst [vmem:[%s3213_s2 + $0x400] sm:$0xff] %v515_v0  ;;  %v1411_v3 = vld [vmem:[%s3214_s1 + $0x18] sm:$0xff]  ;;  %1408 = vst [vmem:[%s3213_s2 + $0x408] sm:$0xff] %v1407_v1  ;;  %v1413_v4 = vld [vmem:[%s3214_s1 + $0x20] sm:$0xff] }
  0x43   :  { %1410 = vst [vmem:[%s3213_s2 + $0x410] sm:$0xff] %v1409_v2  ;;  %1412 = vst [vmem:[%s3213_s2 + $0x418] sm:$0xff] %v1411_v3  ;;  %v1415_v5 = vld [vmem:[%s3214_s1 + $0x28] sm:$0xff]  ;;  %v1417_v6 = vld [vmem:[%s3214_s1 + $0x30] sm:$0xff] }
  0x44   :  { %1414 = vst [vmem:[%s3213_s2 + $0x420] sm:$0xff] %v1413_v4  ;;  %1416 = vst [vmem:[%s3213_s2 + $0x428] sm:$0xff] %v1415_v5  ;;  %v1419_v7 = vld [vmem:[%s3214_s1 + $0x38] sm:$0xff]  ;;  %v1421_v8 = vld [vmem:[%s3214_s1 + $0x40] sm:$0xff] }
  0x45   :  { %1418 = vst [vmem:[%s3213_s2 + $0x430] sm:$0xff] %v1417_v6  ;;  %v1423_v9 = vld [vmem:[%s3214_s1 + $0x48] sm:$0xff]  ;;  %1420 = vst [vmem:[%s3213_s2 + $0x438] sm:$0xff] %v1419_v7  ;;  %v1425_v10 = vld [vmem:[%s3214_s1 + $0x50] sm:$0xff] }
  0x46   :  { %1422 = vst [vmem:[%s3213_s2 + $0x440] sm:$0xff] %v1421_v8  ;;  %1424 = vst [vmem:[%s3213_s2 + $0x448] sm:$0xff] %v1423_v9  ;;  %v1427_v11 = vld [vmem:[%s3214_s1 + $0x58] sm:$0xff]  ;;  %v1429_v12 = vld [vmem:[%s3214_s1 + $0x60] sm:$0xff] }
  0x47   :  { %1426 = vst [vmem:[%s3213_s2 + $0x450] sm:$0xff] %v1425_v10  ;;  %1428 = vst [vmem:[%s3213_s2 + $0x458] sm:$0xff] %v1427_v11  ;;  %v1431_v13 = vld [vmem:[%s3214_s1 + $0x68] sm:$0xff]  ;;  %v1433_v14 = vld [vmem:[%s3214_s1 + $0x70] sm:$0xff] }
  0x48   :  { %1430 = vst [vmem:[%s3213_s2 + $0x460] sm:$0xff] %v1429_v12  ;;  %v1435_v15 = vld [vmem:[%s3214_s1 + $0x78] sm:$0xff]  ;;  %1432 = vst [vmem:[%s3213_s2 + $0x468] sm:$0xff] %v1431_v13  ;;  %v1437_v16 = vld [vmem:[%s3214_s1 + $0x80] sm:$0xff] }
  0x49   :  { %1434 = vst [vmem:[%s3213_s2 + $0x470] sm:$0xff] %v1433_v14  ;;  %1436 = vst [vmem:[%s3213_s2 + $0x478] sm:$0xff] %v1435_v15  ;;  %v1439_v17 = vld [vmem:[%s3214_s1 + $0x88] sm:$0xff]  ;;  %v1441_v18 = vld [vmem:[%s3214_s1 + $0x90] sm:$0xff] }
  0x4a   :  { %1438 = vst [vmem:[%s3213_s2 + $0x480] sm:$0xff] %v1437_v16  ;;  %1440 = vst [vmem:[%s3213_s2 + $0x488] sm:$0xff] %v1439_v17  ;;  %v1443_v19 = vld [vmem:[%s3214_s1 + $0x98] sm:$0xff]  ;;  %v1445_v20 = vld [vmem:[%s3214_s1 + $0xa0] sm:$0xff] }
  0x4b   :  { %1442 = vst [vmem:[%s3213_s2 + $0x490] sm:$0xff] %v1441_v18  ;;  %v1447_v21 = vld [vmem:[%s3214_s1 + $0xa8] sm:$0xff]  ;;  %1444 = vst [vmem:[%s3213_s2 + $0x498] sm:$0xff] %v1443_v19  ;;  %v1449_v22 = vld [vmem:[%s3214_s1 + $0xb0] sm:$0xff] }
  0x4c   :  { %1446 = vst [vmem:[%s3213_s2 + $0x4a0] sm:$0xff] %v1445_v20  ;;  %1448 = vst [vmem:[%s3213_s2 + $0x4a8] sm:$0xff] %v1447_v21  ;;  %v1451_v23 = vld [vmem:[%s3214_s1 + $0xb8] sm:$0xff]  ;;  %v1453_v24 = vld [vmem:[%s3214_s1 + $0xc0] sm:$0xff] }
  0x4d   :  { %1450 = vst [vmem:[%s3213_s2 + $0x4b0] sm:$0xff] %v1449_v22  ;;  %1452 = vst [vmem:[%s3213_s2 + $0x4b8] sm:$0xff] %v1451_v23  ;;  %v1455_v25 = vld [vmem:[%s3214_s1 + $0xc8] sm:$0xff]  ;;  %v1457_v26 = vld [vmem:[%s3214_s1 + $0xd0] sm:$0xff] }
  0x4e   :  { %1454 = vst [vmem:[%s3213_s2 + $0x4c0] sm:$0xff] %v1453_v24  ;;  %v1459_v27 = vld [vmem:[%s3214_s1 + $0xd8] sm:$0xff]  ;;  %1456 = vst [vmem:[%s3213_s2 + $0x4c8] sm:$0xff] %v1455_v25  ;;  %v1461_v28 = vld [vmem:[%s3214_s1 + $0xe0] sm:$0xff] }
  0x4f   :  { %1458 = vst [vmem:[%s3213_s2 + $0x4d0] sm:$0xff] %v1457_v26  ;;  %1460 = vst [vmem:[%s3213_s2 + $0x4d8] sm:$0xff] %v1459_v27  ;;  %v1463_v29 = vld [vmem:[%s3214_s1 + $0xe8] sm:$0xff]  ;;  %v1465_v30 = vld [vmem:[%s3214_s1 + $0xf0] sm:$0xff] }
  0x50   :  { %1462 = vst [vmem:[%s3213_s2 + $0x4e0] sm:$0xff] %v1461_v28  ;;  %1464 = vst [vmem:[%s3213_s2 + $0x4e8] sm:$0xff] %v1463_v29  ;;  %v1467_v31 = vld [vmem:[%s3214_s1 + $0xf8] sm:$0xff]  ;;  %v1469_v32 = vld [vmem:[%s3214_s1 + $0x100] sm:$0xff] }
  0x51   :  { %1466 = vst [vmem:[%s3213_s2 + $0x4f0] sm:$0xff] %v1465_v30  ;;  %v1471_v33 = vld [vmem:[%s3214_s1 + $0x108] sm:$0xff]  ;;  %1468 = vst [vmem:[%s3213_s2 + $0x4f8] sm:$0xff] %v1467_v31  ;;  %v1473_v34 = vld [vmem:[%s3214_s1 + $0x110] sm:$0xff] }
  0x52   :  { %1470 = vst [vmem:[%s3213_s2 + $0x500] sm:$0xff] %v1469_v32  ;;  %1472 = vst [vmem:[%s3213_s2 + $0x508] sm:$0xff] %v1471_v33  ;;  %v1475_v35 = vld [vmem:[%s3214_s1 + $0x118] sm:$0xff]  ;;  %v1477_v36 = vld [vmem:[%s3214_s1 + $0x120] sm:$0xff] }
  0x53   :  { %1474 = vst [vmem:[%s3213_s2 + $0x510] sm:$0xff] %v1473_v34  ;;  %1476 = vst [vmem:[%s3213_s2 + $0x518] sm:$0xff] %v1475_v35  ;;  %v1479_v37 = vld [vmem:[%s3214_s1 + $0x128] sm:$0xff]  ;;  %v1481_v38 = vld [vmem:[%s3214_s1 + $0x130] sm:$0xff] }
  0x54   :  { %1478 = vst [vmem:[%s3213_s2 + $0x520] sm:$0xff] %v1477_v36  ;;  %v1483_v39 = vld [vmem:[%s3214_s1 + $0x138] sm:$0xff]  ;;  %1480 = vst [vmem:[%s3213_s2 + $0x528] sm:$0xff] %v1479_v37  ;;  %v1485_v40 = vld [vmem:[%s3214_s1 + $0x140] sm:$0xff] }
  0x55   :  { %1482 = vst [vmem:[%s3213_s2 + $0x530] sm:$0xff] %v1481_v38  ;;  %1484 = vst [vmem:[%s3213_s2 + $0x538] sm:$0xff] %v1483_v39  ;;  %v1487_v41 = vld [vmem:[%s3214_s1 + $0x148] sm:$0xff]  ;;  %v1489_v42 = vld [vmem:[%s3214_s1 + $0x150] sm:$0xff] }
  0x56   :  { %1486 = vst [vmem:[%s3213_s2 + $0x540] sm:$0xff] %v1485_v40  ;;  %1488 = vst [vmem:[%s3213_s2 + $0x548] sm:$0xff] %v1487_v41  ;;  %v1491_v43 = vld [vmem:[%s3214_s1 + $0x158] sm:$0xff]  ;;  %v1493_v44 = vld [vmem:[%s3214_s1 + $0x160] sm:$0xff] }
  0x57   :  { %1490 = vst [vmem:[%s3213_s2 + $0x550] sm:$0xff] %v1489_v42  ;;  %v1495_v45 = vld [vmem:[%s3214_s1 + $0x168] sm:$0xff]  ;;  %1492 = vst [vmem:[%s3213_s2 + $0x558] sm:$0xff] %v1491_v43  ;;  %v1497_v46 = vld [vmem:[%s3214_s1 + $0x170] sm:$0xff] }
  0x58   :  { %1494 = vst [vmem:[%s3213_s2 + $0x560] sm:$0xff] %v1493_v44  ;;  %1496 = vst [vmem:[%s3213_s2 + $0x568] sm:$0xff] %v1495_v45  ;;  %v1499_v47 = vld [vmem:[%s3214_s1 + $0x178] sm:$0xff]  ;;  %v1501_v48 = vld [vmem:[%s3214_s1 + $0x180] sm:$0xff] }
  0x59   :  { %1498 = vst [vmem:[%s3213_s2 + $0x570] sm:$0xff] %v1497_v46  ;;  %1500 = vst [vmem:[%s3213_s2 + $0x578] sm:$0xff] %v1499_v47  ;;  %v1503_v49 = vld [vmem:[%s3214_s1 + $0x188] sm:$0xff]  ;;  %v1505_v50 = vld [vmem:[%s3214_s1 + $0x190] sm:$0xff] }
  0x5a   :  { %1502 = vst [vmem:[%s3213_s2 + $0x580] sm:$0xff] %v1501_v48  ;;  %v1507_v51 = vld [vmem:[%s3214_s1 + $0x198] sm:$0xff]  ;;  %1504 = vst [vmem:[%s3213_s2 + $0x588] sm:$0xff] %v1503_v49  ;;  %v1509_v52 = vld [vmem:[%s3214_s1 + $0x1a0] sm:$0xff] }
  0x5b   :  { %1506 = vst [vmem:[%s3213_s2 + $0x590] sm:$0xff] %v1505_v50  ;;  %1508 = vst [vmem:[%s3213_s2 + $0x598] sm:$0xff] %v1507_v51  ;;  %v1511_v53 = vld [vmem:[%s3214_s1 + $0x1a8] sm:$0xff]  ;;  %v1513_v54 = vld [vmem:[%s3214_s1 + $0x1b0] sm:$0xff] }
  0x5c   :  { %1510 = vst [vmem:[%s3213_s2 + $0x5a0] sm:$0xff] %v1509_v52  ;;  %1512 = vst [vmem:[%s3213_s2 + $0x5a8] sm:$0xff] %v1511_v53  ;;  %v1515_v55 = vld [vmem:[%s3214_s1 + $0x1b8] sm:$0xff]  ;;  %v1517_v56 = vld [vmem:[%s3214_s1 + $0x1c0] sm:$0xff] }
  0x5d   :  { %1514 = vst [vmem:[%s3213_s2 + $0x5b0] sm:$0xff] %v1513_v54  ;;  %v1519_v57 = vld [vmem:[%s3214_s1 + $0x1c8] sm:$0xff]  ;;  %1516 = vst [vmem:[%s3213_s2 + $0x5b8] sm:$0xff] %v1515_v55  ;;  %v1521_v58 = vld [vmem:[%s3214_s1 + $0x1d0] sm:$0xff] }
  0x5e   :  { %1518 = vst [vmem:[%s3213_s2 + $0x5c0] sm:$0xff] %v1517_v56  ;;  %1520 = vst [vmem:[%s3213_s2 + $0x5c8] sm:$0xff] %v1519_v57  ;;  %v1523_v59 = vld [vmem:[%s3214_s1 + $0x1d8] sm:$0xff]  ;;  %v1525_v60 = vld [vmem:[%s3214_s1 + $0x1e0] sm:$0xff] }
  0x5f   :  { %1522 = vst [vmem:[%s3213_s2 + $0x5d0] sm:$0xff] %v1521_v58  ;;  %1524 = vst [vmem:[%s3213_s2 + $0x5d8] sm:$0xff] %v1523_v59  ;;  %v1527_v61 = vld [vmem:[%s3214_s1 + $0x1e8] sm:$0xff]  ;;  %v1529_v62 = vld [vmem:[%s3214_s1 + $0x1f0] sm:$0xff] }
  0x60   :  { %1526 = vst [vmem:[%s3213_s2 + $0x5e0] sm:$0xff] %v1525_v60  ;;  %v1531_v63 = vld [vmem:[%s3214_s1 + $0x1f8] sm:$0xff]  ;;  %1528 = vst [vmem:[%s3213_s2 + $0x5e8] sm:$0xff] %v1527_v61  ;;  %v1533_v0 = vld [vmem:[%s3214_s1 + $0x200] sm:$0xff] }
  0x61   :  { %1530 = vst [vmem:[%s3213_s2 + $0x5f0] sm:$0xff] %v1529_v62  ;;  %1532 = vst [vmem:[%s3213_s2 + $0x5f8] sm:$0xff] %v1531_v63  ;;  %v1535_v1 = vld [vmem:[%s3214_s1 + $0x208] sm:$0xff]  ;;  %v1537_v2 = vld [vmem:[%s3214_s1 + $0x210] sm:$0xff] }
  0x62   :  { %1534 = vst [vmem:[%s3213_s2 + $0x600] sm:$0xff] %v1533_v0  ;;  %1536 = vst [vmem:[%s3213_s2 + $0x608] sm:$0xff] %v1535_v1  ;;  %v1539_v3 = vld [vmem:[%s3214_s1 + $0x218] sm:$0xff]  ;;  %v1541_v4 = vld [vmem:[%s3214_s1 + $0x220] sm:$0xff] }
  0x63   :  { %1538 = vst [vmem:[%s3213_s2 + $0x610] sm:$0xff] %v1537_v2  ;;  %v1543_v5 = vld [vmem:[%s3214_s1 + $0x228] sm:$0xff]  ;;  %1540 = vst [vmem:[%s3213_s2 + $0x618] sm:$0xff] %v1539_v3  ;;  %v1545_v6 = vld [vmem:[%s3214_s1 + $0x230] sm:$0xff] }
  0x64   :  { %1542 = vst [vmem:[%s3213_s2 + $0x620] sm:$0xff] %v1541_v4  ;;  %1544 = vst [vmem:[%s3213_s2 + $0x628] sm:$0xff] %v1543_v5  ;;  %v1547_v7 = vld [vmem:[%s3214_s1 + $0x238] sm:$0xff]  ;;  %v1549_v8 = vld [vmem:[%s3214_s1 + $0x240] sm:$0xff] }
  0x65   :  { %1546 = vst [vmem:[%s3213_s2 + $0x630] sm:$0xff] %v1545_v6  ;;  %1548 = vst [vmem:[%s3213_s2 + $0x638] sm:$0xff] %v1547_v7  ;;  %v1551_v9 = vld [vmem:[%s3214_s1 + $0x248] sm:$0xff]  ;;  %v1553_v10 = vld [vmem:[%s3214_s1 + $0x250] sm:$0xff] }
  0x66   :  { %1550 = vst [vmem:[%s3213_s2 + $0x640] sm:$0xff] %v1549_v8  ;;  %v1555_v11 = vld [vmem:[%s3214_s1 + $0x258] sm:$0xff]  ;;  %1552 = vst [vmem:[%s3213_s2 + $0x648] sm:$0xff] %v1551_v9  ;;  %v1557_v12 = vld [vmem:[%s3214_s1 + $0x260] sm:$0xff] }
  0x67   :  { %1554 = vst [vmem:[%s3213_s2 + $0x650] sm:$0xff] %v1553_v10  ;;  %1556 = vst [vmem:[%s3213_s2 + $0x658] sm:$0xff] %v1555_v11  ;;  %v1559_v13 = vld [vmem:[%s3214_s1 + $0x268] sm:$0xff]  ;;  %v1561_v14 = vld [vmem:[%s3214_s1 + $0x270] sm:$0xff] }
  0x68   :  { %1558 = vst [vmem:[%s3213_s2 + $0x660] sm:$0xff] %v1557_v12  ;;  %1560 = vst [vmem:[%s3213_s2 + $0x668] sm:$0xff] %v1559_v13  ;;  %v1563_v15 = vld [vmem:[%s3214_s1 + $0x278] sm:$0xff]  ;;  %v1565_v16 = vld [vmem:[%s3214_s1 + $0x280] sm:$0xff] }
  0x69   :  { %1562 = vst [vmem:[%s3213_s2 + $0x670] sm:$0xff] %v1561_v14  ;;  %v1567_v17 = vld [vmem:[%s3214_s1 + $0x288] sm:$0xff]  ;;  %1564 = vst [vmem:[%s3213_s2 + $0x678] sm:$0xff] %v1563_v15  ;;  %v1569_v18 = vld [vmem:[%s3214_s1 + $0x290] sm:$0xff] }
  0x6a   :  { %1566 = vst [vmem:[%s3213_s2 + $0x680] sm:$0xff] %v1565_v16  ;;  %1568 = vst [vmem:[%s3213_s2 + $0x688] sm:$0xff] %v1567_v17  ;;  %v1571_v19 = vld [vmem:[%s3214_s1 + $0x298] sm:$0xff]  ;;  %v1573_v20 = vld [vmem:[%s3214_s1 + $0x2a0] sm:$0xff] }
  0x6b   :  { %1570 = vst [vmem:[%s3213_s2 + $0x690] sm:$0xff] %v1569_v18  ;;  %1572 = vst [vmem:[%s3213_s2 + $0x698] sm:$0xff] %v1571_v19  ;;  %v1575_v21 = vld [vmem:[%s3214_s1 + $0x2a8] sm:$0xff]  ;;  %v1577_v22 = vld [vmem:[%s3214_s1 + $0x2b0] sm:$0xff] }
  0x6c   :  { %1574 = vst [vmem:[%s3213_s2 + $0x6a0] sm:$0xff] %v1573_v20  ;;  %v1579_v23 = vld [vmem:[%s3214_s1 + $0x2b8] sm:$0xff]  ;;  %1576 = vst [vmem:[%s3213_s2 + $0x6a8] sm:$0xff] %v1575_v21  ;;  %v1581_v24 = vld [vmem:[%s3214_s1 + $0x2c0] sm:$0xff] }
  0x6d   :  { %1578 = vst [vmem:[%s3213_s2 + $0x6b0] sm:$0xff] %v1577_v22  ;;  %1580 = vst [vmem:[%s3213_s2 + $0x6b8] sm:$0xff] %v1579_v23  ;;  %v1583_v25 = vld [vmem:[%s3214_s1 + $0x2c8] sm:$0xff]  ;;  %v1585_v26 = vld [vmem:[%s3214_s1 + $0x2d0] sm:$0xff] }
  0x6e   :  { %1582 = vst [vmem:[%s3213_s2 + $0x6c0] sm:$0xff] %v1581_v24  ;;  %1584 = vst [vmem:[%s3213_s2 + $0x6c8] sm:$0xff] %v1583_v25  ;;  %v1587_v27 = vld [vmem:[%s3214_s1 + $0x2d8] sm:$0xff]  ;;  %v1589_v28 = vld [vmem:[%s3214_s1 + $0x2e0] sm:$0xff] }
  0x6f   :  { %1586 = vst [vmem:[%s3213_s2 + $0x6d0] sm:$0xff] %v1585_v26  ;;  %v1591_v29 = vld [vmem:[%s3214_s1 + $0x2e8] sm:$0xff]  ;;  %1588 = vst [vmem:[%s3213_s2 + $0x6d8] sm:$0xff] %v1587_v27  ;;  %v1593_v30 = vld [vmem:[%s3214_s1 + $0x2f0] sm:$0xff] }
  0x70   :  { %1590 = vst [vmem:[%s3213_s2 + $0x6e0] sm:$0xff] %v1589_v28  ;;  %1592 = vst [vmem:[%s3213_s2 + $0x6e8] sm:$0xff] %v1591_v29  ;;  %v1595_v31 = vld [vmem:[%s3214_s1 + $0x2f8] sm:$0xff]  ;;  %v1597_v32 = vld [vmem:[%s3214_s1 + $0x300] sm:$0xff] }
  0x71   :  { %1594 = vst [vmem:[%s3213_s2 + $0x6f0] sm:$0xff] %v1593_v30  ;;  %1596 = vst [vmem:[%s3213_s2 + $0x6f8] sm:$0xff] %v1595_v31  ;;  %v1599_v33 = vld [vmem:[%s3214_s1 + $0x308] sm:$0xff]  ;;  %v1601_v34 = vld [vmem:[%s3214_s1 + $0x310] sm:$0xff] }
  0x72   :  { %1598 = vst [vmem:[%s3213_s2 + $0x700] sm:$0xff] %v1597_v32  ;;  %v1603_v35 = vld [vmem:[%s3214_s1 + $0x318] sm:$0xff]  ;;  %1600 = vst [vmem:[%s3213_s2 + $0x708] sm:$0xff] %v1599_v33  ;;  %v1605_v36 = vld [vmem:[%s3214_s1 + $0x320] sm:$0xff] }
  0x73   :  { %1602 = vst [vmem:[%s3213_s2 + $0x710] sm:$0xff] %v1601_v34  ;;  %1604 = vst [vmem:[%s3213_s2 + $0x718] sm:$0xff] %v1603_v35  ;;  %v1607_v37 = vld [vmem:[%s3214_s1 + $0x328] sm:$0xff]  ;;  %v1609_v38 = vld [vmem:[%s3214_s1 + $0x330] sm:$0xff] }
  0x74   :  { %1606 = vst [vmem:[%s3213_s2 + $0x720] sm:$0xff] %v1605_v36  ;;  %1608 = vst [vmem:[%s3213_s2 + $0x728] sm:$0xff] %v1607_v37  ;;  %v1611_v39 = vld [vmem:[%s3214_s1 + $0x338] sm:$0xff]  ;;  %v1613_v40 = vld [vmem:[%s3214_s1 + $0x340] sm:$0xff] }
  0x75   :  { %1610 = vst [vmem:[%s3213_s2 + $0x730] sm:$0xff] %v1609_v38  ;;  %v1615_v41 = vld [vmem:[%s3214_s1 + $0x348] sm:$0xff]  ;;  %1612 = vst [vmem:[%s3213_s2 + $0x738] sm:$0xff] %v1611_v39  ;;  %v1617_v42 = vld [vmem:[%s3214_s1 + $0x350] sm:$0xff] }
  0x76   :  { %1614 = vst [vmem:[%s3213_s2 + $0x740] sm:$0xff] %v1613_v40  ;;  %1616 = vst [vmem:[%s3213_s2 + $0x748] sm:$0xff] %v1615_v41  ;;  %v1619_v43 = vld [vmem:[%s3214_s1 + $0x358] sm:$0xff]  ;;  %v1621_v44 = vld [vmem:[%s3214_s1 + $0x360] sm:$0xff] }
  0x77   :  { %1618 = vst [vmem:[%s3213_s2 + $0x750] sm:$0xff] %v1617_v42  ;;  %1620 = vst [vmem:[%s3213_s2 + $0x758] sm:$0xff] %v1619_v43  ;;  %v1623_v45 = vld [vmem:[%s3214_s1 + $0x368] sm:$0xff]  ;;  %v1625_v46 = vld [vmem:[%s3214_s1 + $0x370] sm:$0xff] }
  0x78   :  { %1622 = vst [vmem:[%s3213_s2 + $0x760] sm:$0xff] %v1621_v44  ;;  %v1627_v47 = vld [vmem:[%s3214_s1 + $0x378] sm:$0xff]  ;;  %1624 = vst [vmem:[%s3213_s2 + $0x768] sm:$0xff] %v1623_v45  ;;  %v1629_v48 = vld [vmem:[%s3214_s1 + $0x380] sm:$0xff] }
  0x79   :  { %1626 = vst [vmem:[%s3213_s2 + $0x770] sm:$0xff] %v1625_v46  ;;  %1628 = vst [vmem:[%s3213_s2 + $0x778] sm:$0xff] %v1627_v47  ;;  %v1631_v49 = vld [vmem:[%s3214_s1 + $0x388] sm:$0xff]  ;;  %v1633_v50 = vld [vmem:[%s3214_s1 + $0x390] sm:$0xff] }
  0x7a   :  { %1630 = vst [vmem:[%s3213_s2 + $0x780] sm:$0xff] %v1629_v48  ;;  %1632 = vst [vmem:[%s3213_s2 + $0x788] sm:$0xff] %v1631_v49  ;;  %v1635_v51 = vld [vmem:[%s3214_s1 + $0x398] sm:$0xff]  ;;  %v1637_v52 = vld [vmem:[%s3214_s1 + $0x3a0] sm:$0xff] }
  0x7b   :  { %1634 = vst [vmem:[%s3213_s2 + $0x790] sm:$0xff] %v1633_v50  ;;  %v1639_v53 = vld [vmem:[%s3214_s1 + $0x3a8] sm:$0xff]  ;;  %1636 = vst [vmem:[%s3213_s2 + $0x798] sm:$0xff] %v1635_v51  ;;  %v1641_v54 = vld [vmem:[%s3214_s1 + $0x3b0] sm:$0xff] }
  0x7c   :  { %1638 = vst [vmem:[%s3213_s2 + $0x7a0] sm:$0xff] %v1637_v52  ;;  %1640 = vst [vmem:[%s3213_s2 + $0x7a8] sm:$0xff] %v1639_v53  ;;  %v1643_v55 = vld [vmem:[%s3214_s1 + $0x3b8] sm:$0xff]  ;;  %v1645_v56 = vld [vmem:[%s3214_s1 + $0x3c0] sm:$0xff] }
  0x7d   :  { %1642 = vst [vmem:[%s3213_s2 + $0x7b0] sm:$0xff] %v1641_v54  ;;  %1644 = vst [vmem:[%s3213_s2 + $0x7b8] sm:$0xff] %v1643_v55  ;;  %v1647_v57 = vld [vmem:[%s3214_s1 + $0x3c8] sm:$0xff]  ;;  %v1649_v58 = vld [vmem:[%s3214_s1 + $0x3d0] sm:$0xff] }
  0x7e   :  { %1646 = vst [vmem:[%s3213_s2 + $0x7c0] sm:$0xff] %v1645_v56  ;;  %v1651_v59 = vld [vmem:[%s3214_s1 + $0x3d8] sm:$0xff]  ;;  %1648 = vst [vmem:[%s3213_s2 + $0x7c8] sm:$0xff] %v1647_v57  ;;  %v1653_v60 = vld [vmem:[%s3214_s1 + $0x3e0] sm:$0xff] }
  0x7f   :  { %1650 = vst [vmem:[%s3213_s2 + $0x7d0] sm:$0xff] %v1649_v58  ;;  %1652 = vst [vmem:[%s3213_s2 + $0x7d8] sm:$0xff] %v1651_v59  ;;  %v1655_v61 = vld [vmem:[%s3214_s1 + $0x3e8] sm:$0xff]  ;;  %v1657_v62 = vld [vmem:[%s3214_s1 + $0x3f0] sm:$0xff] }
  0x80   :  { %1654 = vst [vmem:[%s3213_s2 + $0x7e0] sm:$0xff] %v1653_v60  ;;  %1656 = vst [vmem:[%s3213_s2 + $0x7e8] sm:$0xff] %v1655_v61  ;;  %v1659_v63 = vld [vmem:[%s3214_s1 + $0x3f8] sm:$0xff] }
  0x81   :  { %1658 = vst [vmem:[%s3213_s2 + $0x7f0] sm:$0xff] %v1657_v62  ;;  %1660 = vst [vmem:[%s3213_s2 + $0x7f8] sm:$0xff] %v1659_v63 }

</bundles_post_ra>
